<compile_context>
chip_gen: v7x
topology: tpu7x:2x2x1
jax: 0.10.0
libtpu: 0.0.40
codegen_flags: <defaults>
</compile_context>

<pallas_src>
import functools

import jax
import jax.numpy as jnp
from jax.experimental import pallas as pl
from jax.experimental.pallas import tpu as pltpu

NUM_CLASSES = 285
PADDED_CLASSES = 384  # next multiple of 128 -> lane-dense output stores
ROW_ALIGN = 8         # sublane group


def _head_kernel(x_ref, w_ref, o_ref):
    # x_ref: (tm, size)            compute dtype (f32 or bf16), VMEM
    # w_ref: (PADDED_CLASSES, size) compute dtype, VMEM (PyTorch layout)
    # o_ref: (tm, PADDED_CLASSES)  f32
    # feats @ weight.T expressed as a contraction over dim 1 of both operands
    # (trans_b) -> feeds the MXU directly, no transposed VMEM copy.
    o_ref[...] = jax.lax.dot_general(
        x_ref[...],
        w_ref[...],
        dimension_numbers=(((1,), (1,)), ((), ())),
        preferred_element_type=jnp.float32,
    ).astype(o_ref.dtype)


def classifier_head(feats, weight, *, compute_dtype=None, block_rows=256):
    """feats: (B, size), weight: (285, size) -> logits (B, 285) f32.

    compute_dtype: None keeps the input dtype (f32 -> exact torch.mm match);
                   jnp.bfloat16 halves weight DMA bytes on v6e/v7x MXUs.
    block_rows:    batch tile when B is large (multiple of 8; 128 suits v5e,
                   256 suits v6e/v7x and stays well inside v7x's 64 MiB VMEM).
    """
    B, size = feats.shape
    n_cls, size_w = weight.shape
    assert size == size_w and n_cls == NUM_CLASSES
    assert block_rows % ROW_ALIGN == 0

    if compute_dtype is None:
        compute_dtype = feats.dtype

    # ---- row / class padding (zero rows keep sliced results bit-exact) ----
    if B <= block_rows:
        tm = ((B + ROW_ALIGN - 1) // ROW_ALIGN) * ROW_ALIGN
        grid_rows = 1
    else:
        tm = block_rows
        grid_rows = pl.cdiv(B, tm)
    b_pad = tm * grid_rows

    feats_c = jnp.pad(feats, ((0, b_pad - B), (0, 0))).astype(compute_dtype)
    w_c = jnp.pad(weight, ((0, PADDED_CLASSES - NUM_CLASSES), (0, 0))).astype(compute_dtype)

    itemsize = jnp.dtype(compute_dtype).itemsize
    ce = pl.CostEstimate(
        flops=2 * b_pad * size * PADDED_CLASSES,
        transcendentals=0,
        bytes_accessed=(b_pad * size + PADDED_CLASSES * size) * itemsize
        + b_pad * PADDED_CLASSES * 4,
    )

    out_shape = jax.ShapeDtypeStruct((b_pad, PADDED_CLASSES), jnp.float32)

    if grid_rows == 1:
        # Tiny/moderate batch: single whole-array blocks, no grid bookkeeping.
        out_pad = pl.pallas_call(
            _head_kernel,
            out_shape=out_shape,
            cost_estimate=ce,
        )(feats_c, w_c)
    else:
        # Large batch: tile rows; "parallel" axis lets Mosaic shard tiles
        # across TensorCores (v7x megacore); weight index_map is constant so
        # the weight tile stays VMEM-resident across the batch grid.
        out_pad = pl.pallas_call(
            _head_kernel,
            out_shape=out_shape,
            grid=(grid_rows,),
            in_specs=[
                pl.BlockSpec((tm, size), lambda i: (i, 0)),
                pl.BlockSpec((PADDED_CLASSES, size), lambda i: (0, 0)),
            ],
            out_specs=pl.BlockSpec((tm, PADDED_CLASSES), lambda i: (i, 0)),
            compiler_params=pltpu.CompilerParams(
                dimension_semantics=("parallel",),
            ),
            cost_estimate=ce,
        )(feats_c, w_c)

    # Slice away row/class padding; padded weight rows were zero so padded
    # logits never leak downstream.
    return out_pad[:B, :NUM_CLASSES]


@functools.partial(jax.jit, static_argnames=("compute_dtype", "block_rows"))
def classfier_forward(feats, weight, *, compute_dtype=None, block_rows=256):
    # using_weight = self.weight  (the L2-normalization branch is commented out
    # in the original forward, so it is not applied here either).
    return classifier_head(
        feats, weight, compute_dtype=compute_dtype, block_rows=block_rows
    )


if __name__ == "__main__":
    key = jax.random.PRNGKey(0)
    k_feat, k_w, k_big = jax.random.split(key, 3)

    batch = 2
    size = 32  # MyResNet(size) feature dimension

    # Backbone output stand-in (see TODO above): (B, size) features.
    feats = jax.random.normal(k_feat, (batch, size), dtype=jnp.float32)

    # nn.Parameter(torch.Tensor(285, size)) with nn.init.uniform_(-1, 1)
    weight = jax.random.uniform(
        k_w, (NUM_CLASSES, size), dtype=jnp.float32, minval=-1.0, maxval=1.0
    )

    # --- small batch, f32 (exact torch.mm semantics), single-block path ---
    out = classfier_forward(feats, weight)
    out = jax.block_until_ready(out)
    ref = feats @ weight.T
    assert out.shape == (batch, NUM_CLASSES), out.shape
    assert jnp.allclose(out, ref, atol=1e-5, rtol=1e-5)

    # --- larger batch exercising the tiled "parallel" grid path ---
    big_b = 300
    feats_big = jax.random.normal(k_big, (big_b, size), dtype=jnp.float32)
    out_big = classfier_forward(feats_big, weight, block_rows=128)
    out_big = jax.block_until_ready(out_big)
    ref_big = feats_big @ weight.T
    assert out_big.shape == (big_b, NUM_CLASSES), out_big.shape
    assert jnp.allclose(out_big, ref_big, atol=1e-5, rtol=1e-5)

    # --- bf16 operand path (v6e/v7x MXU-native), f32 accumulation ---
    out_bf16 = classfier_forward(feats_big, weight, compute_dtype=jnp.bfloat16)
    out_bf16 = jax.block_until_ready(out_bf16)
    assert jnp.allclose(out_bf16, ref_big, atol=1e-1, rtol=5e-2)

    print("KERNEL_OK")
</pallas_src>

<mosaic_0001>
module attributes {stable_mosaic.version = 11 : i64} {
  func.func @_head_kernel(%arg0: memref<8x32xf32, #tpu.memory_space<vmem>>, %arg1: memref<384x32xf32, #tpu.memory_space<vmem>>, %arg2: memref<8x384xf32, #tpu.memory_space<vmem>>) attributes {dimension_semantics = [], scalar_prefetch = 0 : i64, scratch_operands = 0 : i64, tpu.core_type = #tpu.core_type<tc>} {
    %c0 = arith.constant 0 : index
    %c0_0 = arith.constant 0 : index
    %0 = vector.load %arg0[%c0, %c0_0] : memref<8x32xf32, #tpu.memory_space<vmem>>, vector<8x32xf32>
    %c0_1 = arith.constant 0 : index
    %c0_2 = arith.constant 0 : index
    %1 = vector.load %arg1[%c0_1, %c0_2] : memref<384x32xf32, #tpu.memory_space<vmem>>, vector<384x32xf32>
    %cst = arith.constant dense<0.000000e+00> : vector<8x384xf32>
    %2 = tpu.matmul %0, %1, %cst {dimension_numbers = #tpu.dot_dimension_numbers<[1], [1], [0], [0], [0, 0, 1, 0], [], []>} : vector<8x32xf32>, vector<384x32xf32>, vector<8x384xf32> -> vector<8x384xf32>
    %c0_3 = arith.constant 0 : index
    %c0_4 = arith.constant 0 : index
    %3 = vector.load %arg2[%c0_3, %c0_4] : memref<8x384xf32, #tpu.memory_space<vmem>>, vector<8x384xf32>
    tpu.vector_store %arg2[%c0_3, %c0_4], %2 {strides = array<i32>} : memref<8x384xf32, #tpu.memory_space<vmem>>, vector<8x384xf32>,
    return
  }
}

</mosaic_0001>

<bundles_post_ra>
// kernel: classfier_forward.1
= control target key start
LH: loop header
LB: loop body
LE: loop exit
PB: predicated region body
PF: predicated region fallthrough
CT: control target
= control target key end

     0   :  { %vm60_vm0 = vcmask 261120   ;;  %v575_v3 = vmov 0.0|0.0   ;;  %vm576_vm2 = vmmov 0   ;;  %v577_v4 = vmov 0.0   ;;  %s819_s1 = inlined_call_operand.vmem [shape: f32[384,32], index: 1, kind: input, shape index: {}]   ;;  %s820_s0 = inlined_call_operand.vmem [shape: f32[8,32], index: 0, kind: input, shape index: {}]   ;;  %s821_s2 = inlined_call_operand.vmem [shape: f32[8,384], index: 2, kind: output, shape index: {}]  }
   0x1   :  { %v28_v0 = vld [vmem:[%s819_s1 + $0x80] sm:$0xff]  ;;  %v29_v1 = vld [vmem:[%s819_s1 + $0x88] sm:$0xff]  ;;  %vm601_vm1 = vmpackc.low %vm60_vm0, %vm60_vm0  ;;  %540 = vmatprep.subr.bf16.mxu1 %v575_v3  ;;  %489 = vmatprep.mubr.msk.f32.mxu1 %vm576_vm2, %v577_v4 }
   0x2   :  { %v492_v5 = vpack.c.bf16 %v29_v1, %v28_v0  ;;  %v12_v6 = vld [vmem:[%s819_s1] sm:$0xff]  ;;  %v13_v7 = vld [vmem:[%s819_s1 + $0x8] sm:$0xff]  ;;  %v30_v11 = vld [vmem:[%s819_s1 + $0x90] sm:$0xff] }
   0x3   :  { %v44_v8 = vld [vmem:[%s819_s1 + $0x100] sm:$0xff]  ;;  %v495_v9 = vpack.c.bf16 %v13_v7, %v12_v6  ;;  %v45_v10 = vld [vmem:[%s819_s1 + $0x108] sm:$0xff]  ;;  %v31_v12 = vld [vmem:[%s819_s1 + $0x98] sm:$0xff] }
   0x4   :  { %494 = vmatprep.subr.msk.bf16.mxu0 %vm601_vm1, %v492_v5  ;;  %v541_v13 = vpack.c.bf16 %v45_v10, %v44_v8  ;;  %v498_v14 = vpack.c.bf16 %v31_v12, %v30_v11  ;;  %v14_v15 = vld [vmem:[%s819_s1 + $0x10] sm:$0xff]  ;;  %v15_v16 = vld [vmem:[%s819_s1 + $0x18] sm:$0xff]  ;;  %v32_v19 = vld [vmem:[%s819_s1 + $0xa0] sm:$0xff] }
   0x5   :  { %497 = vmatpush3.bf16.xpose.msk.msra.mxu0 %vm601_vm1, %v495_v9  ;;  %v46_v17 = vld [vmem:[%s819_s1 + $0x110] sm:$0xff]  ;;  %v47_v18 = vld [vmem:[%s819_s1 + $0x118] sm:$0xff]  ;;  %v33_v20 = vld [vmem:[%s819_s1 + $0xa8] sm:$0xff]  ;;  %v501_v21 = vpack.c.bf16 %v15_v16, %v14_v15 }
   0x6   :  { %543 = vmatpush3.bf16.xpose.msk.msra.mxu1 %vm601_vm1, %v541_v13  ;;  %500 = vmatprep.subr.msk.bf16.mxu0 %vm601_vm1, %v498_v14  ;;  %v545_v22 = vpack.c.bf16 %v47_v18, %v46_v17  ;;  %v504_v23 = vpack.c.bf16 %v33_v20, %v32_v19  ;;  %v16_v24 = vld [vmem:[%s819_s1 + $0x20] sm:$0xff]  ;;  %v17_v25 = vld [vmem:[%s819_s1 + $0x28] sm:$0xff]  ;;  %v34_v28 = vld [vmem:[%s819_s1 + $0xb0] sm:$0xff] }
   0x7   :  { %544 = vmatprep.subr.bf16.mxu1 %v575_v3  ;;  %v48_v26 = vld [vmem:[%s819_s1 + $0x120] sm:$0xff]  ;;  %v49_v27 = vld [vmem:[%s819_s1 + $0x128] sm:$0xff]  ;;  %v35_v29 = vld [vmem:[%s819_s1 + $0xb8] sm:$0xff]  ;;  %v507_v30 = vpack.c.bf16 %v17_v25, %v16_v24 }
   0x8   :  { %v679_v31 = vld [vmem:[%s820_s0] sm:$0xff]  ;;  %v549_v32 = vpack.c.bf16 %v49_v27, %v48_v26  ;;  %v510_v33 = vpack.c.bf16 %v35_v29, %v34_v28  ;;  %v18_v34 = vld [vmem:[%s819_s1 + $0x30] sm:$0xff]  ;;  %v19_v35 = vld [vmem:[%s819_s1 + $0x38] sm:$0xff] }
   0x9   :  { %438 = vmatprep.mubr.msk.f32.mxu0 %vm60_vm0, %v679_v31  ;;  %v50_v36 = vld [vmem:[%s819_s1 + $0x130] sm:$0xff]  ;;  %v51_v37 = vld [vmem:[%s819_s1 + $0x138] sm:$0xff]  ;;  %v36_v38 = vld [vmem:[%s819_s1 + $0xc0] sm:$0xff]  ;;  %v513_v40 = vpack.c.bf16 %v19_v35, %v18_v34 }
   0xa   :  { %v37_v39 = vld [vmem:[%s819_s1 + $0xc8] sm:$0xff]  ;;  %v553_v41 = vpack.c.bf16 %v51_v37, %v50_v36  ;;  %v20_v43 = vld [vmem:[%s819_s1 + $0x40] sm:$0xff]  ;;  %v38_v47 = vld [vmem:[%s819_s1 + $0xd0] sm:$0xff] }
   0xb   :  { %v516_v42 = vpack.c.bf16 %v37_v39, %v36_v38  ;;  %v21_v44 = vld [vmem:[%s819_s1 + $0x48] sm:$0xff]  ;;  %v52_v45 = vld [vmem:[%s819_s1 + $0x140] sm:$0xff]  ;;  %v39_v48 = vld [vmem:[%s819_s1 + $0xd8] sm:$0xff] }
   0xc   :  { %v53_v46 = vld [vmem:[%s819_s1 + $0x148] sm:$0xff]  ;;  %v519_v49 = vpack.c.bf16 %v21_v44, %v20_v43  ;;  %v522_v51 = vpack.c.bf16 %v39_v48, %v38_v47  ;;  %v22_v52 = vld [vmem:[%s819_s1 + $0x50] sm:$0xff]  ;;  %v23_v53 = vld [vmem:[%s819_s1 + $0x58] sm:$0xff] }
   0xd   :  { %503 = vmatpush3.bf16.xpose.msk.msra.mxu0 %vm601_vm1, %v501_v21  ;;  %v557_v50 = vpack.c.bf16 %v53_v46, %v52_v45  ;;  %v54_v54 = vld [vmem:[%s819_s1 + $0x150] sm:$0xff]  ;;  %v55_v55 = vld [vmem:[%s819_s1 + $0x158] sm:$0xff]  ;;  %v40_v56 = vld [vmem:[%s819_s1 + $0xe0] sm:$0xff]  ;;  %v525_v58 = vpack.c.bf16 %v23_v53, %v22_v52 }
   0xe   :  { %547 = vmatpush3.bf16.xpose.msk.msra.mxu1 %vm601_vm1, %v545_v22  ;;  %506 = vmatprep.subr.msk.bf16.mxu0 %vm601_vm1, %v504_v23  ;;  %v41_v57 = vld [vmem:[%s819_s1 + $0xe8] sm:$0xff]  ;;  %v561_v59 = vpack.c.bf16 %v55_v55, %v54_v54  ;;  %v24_v61 = vld [vmem:[%s819_s1 + $0x60] sm:$0xff]  ;;  %v42_v1 = vld [vmem:[%s819_s1 + $0xf0] sm:$0xff] }
   0xf   :  { %548 = vmatprep.subr.bf16.mxu1 %v575_v3  ;;  %v528_v60 = vpack.c.bf16 %v41_v57, %v40_v56  ;;  %v25_v62 = vld [vmem:[%s819_s1 + $0x68] sm:$0xff]  ;;  %v56_v63 = vld [vmem:[%s819_s1 + $0x160] sm:$0xff]  ;;  %v43_v4 = vld [vmem:[%s819_s1 + $0xf8] sm:$0xff] }
  0x10   :  { %v57_v0 = vld [vmem:[%s819_s1 + $0x168] sm:$0xff]  ;;  %v531_v5 = vpack.c.bf16 %v25_v62, %v24_v61  ;;  %v534_v7 = vpack.c.bf16 %v43_v4, %v42_v1  ;;  %v26_v8 = vld [vmem:[%s819_s1 + $0x70] sm:$0xff]  ;;  %v27_v9 = vld [vmem:[%s819_s1 + $0x78] sm:$0xff] }
  0x11   :  { %v565_v6 = vpack.c.bf16 %v57_v0, %v56_v63  ;;  %v58_v10 = vld [vmem:[%s819_s1 + $0x170] sm:$0xff]  ;;  %v59_v11 = vld [vmem:[%s819_s1 + $0x178] sm:$0xff]  ;;  %v537_v12 = vpack.c.bf16 %v27_v9, %v26_v8 }
  0x12   :  { %v569_v13 = vpack.c.bf16 %v59_v11, %v58_v10 }
  0x15   :  { %509 = vmatpush3.bf16.xpose.msk.msra.mxu0 %vm601_vm1, %v507_v30 }
  0x16   :  { %551 = vmatpush3.bf16.xpose.msk.msra.mxu1 %vm601_vm1, %v549_v32  ;;  %512 = vmatprep.subr.msk.bf16.mxu0 %vm601_vm1, %v510_v33 }
  0x17   :  { %552 = vmatprep.subr.bf16.mxu1 %v575_v3 }
  0x1d   :  { %515 = vmatpush3.bf16.xpose.msk.msra.mxu0 %vm601_vm1, %v513_v40 }
  0x1e   :  { %555 = vmatpush3.bf16.xpose.msk.msra.mxu1 %vm601_vm1, %v553_v41  ;;  %518 = vmatprep.subr.msk.bf16.mxu0 %vm601_vm1, %v516_v42 }
  0x1f   :  { %556 = vmatprep.subr.bf16.mxu1 %v575_v3 }
  0x25   :  { %521 = vmatpush3.bf16.xpose.msk.msra.mxu0 %vm601_vm1, %v519_v49 }
  0x26   :  { %559 = vmatpush3.bf16.xpose.msk.msra.mxu1 %vm601_vm1, %v557_v50  ;;  %524 = vmatprep.subr.msk.bf16.mxu0 %vm601_vm1, %v522_v51 }
  0x27   :  { %560 = vmatprep.subr.bf16.mxu1 %v575_v3 }
  0x2d   :  { %527 = vmatpush3.bf16.xpose.msk.msra.mxu0 %vm601_vm1, %v525_v58 }
  0x2e   :  { %563 = vmatpush3.bf16.xpose.msk.msra.mxu1 %vm601_vm1, %v561_v59  ;;  %530 = vmatprep.subr.msk.bf16.mxu0 %vm601_vm1, %v528_v60 }
  0x2f   :  { %564 = vmatprep.subr.bf16.mxu1 %v575_v3 }
  0x35   :  { %533 = vmatpush3.bf16.xpose.msk.msra.mxu0 %vm601_vm1, %v531_v5 }
  0x36   :  { %567 = vmatpush3.bf16.xpose.msk.msra.mxu1 %vm601_vm1, %v565_v6  ;;  %536 = vmatprep.subr.msk.bf16.mxu0 %vm601_vm1, %v534_v7 }
  0x37   :  { %568 = vmatprep.subr.bf16.mxu1 %v575_v3 }
  0x3d   :  { %539 = vmatpush3.bf16.xpose.msk.msra.mxu0 %vm601_vm1, %v537_v12 }
  0x3e   :  { %571 = vmatpush3.bf16.xpose.msk.msra.mxu1 %vm601_vm1, %v569_v13 }
  0x44   :  { %439 = vmatmul.mubr.msk.f32.vlgmr.msra.gmra.mrb[0].mxu0 %vm60_vm0, %v679_v31 }
  0x45   :  { %490 = vmatmul.mubr.msk.f32.vlgmr.msra.gmra.mrb[0].mxu1 %vm60_vm0, %v679_v31 }
 0x117   :  { %v274_v3 = vpop.f32.mrb[0].mxu0 }
 0x118   :  { %349 = vst [vmem:[%s821_s2] sm:$0xff] %v274_v3  ;;  %v345_v14 = vpop.f32.mrb[0].mxu1  ;;  %v276_v15 = vpop.f32.mrb[1].mxu0 }
 0x119   :  { %351 = vst [vmem:[%s821_s2 + $0x10] sm:$0xff] %v345_v14  ;;  %350 = vst [vmem:[%s821_s2 + $0x8] sm:$0xff] %v276_v15  ;;  %v491_v2 = vpop.f32.mrb[1].mxu1 }

</bundles_post_ra>
